<compile_context>
chip_gen: v6e
topology: v6e:2x2x1
jax: 0.10.0
libtpu: 0.0.40
codegen_flags: <defaults>
</compile_context>

<pallas_src>
import functools

import jax
import jax.numpy as jnp
from jax import lax
from jax.experimental import pallas as pl
from jax.experimental.pallas import tpu as pltpu


def _pick_row_tile(c: int, target: int) -> int:
    """Largest multiple of 8 that divides C and is <= target (else C itself)."""
    if c <= target:
        return c
    t = (target // 8) * 8
    while t >= 8:
        if c % t == 0:
            return t
        t -= 8
    return c


def _mask_tail(v, n, n_total, tn):
    """Zero the lanes of the last spatial tile that lie beyond N."""
    limit = n_total - n * tn
    lane = lax.broadcasted_iota(jnp.int32, v.shape, 1)
    return jnp.where(lane < limit, v, 0)


# ---------------------------------------------------------------------------
# Pass 1: energy accumulation (directly into the attention output block) and
#         in-place softmax finalisation.
# ---------------------------------------------------------------------------
def _energy_softmax_kernel(*refs, n_total, tn, ragged, matmul_dtype):
    att_ref = refs[-1]                         # (1, tc, C) f32, resident over N axis
    n = pl.program_id(2)

    @pl.when(n == 0)
    def _():
        att_ref[...] = jnp.zeros_like(att_ref)

    xk = refs[-2][0]                           # (C, tn) key rows
    if ragged:
        xk = _mask_tail(xk, n, n_total, tn)
    if matmul_dtype is not None:
        xk = xk.astype(matmul_dtype)

    if len(refs) == 2:
        # Single channel-row tile (tc == C): query rows == key rows, x passed once.
        xq = xk
    else:
        xq = refs[0][0]                        # (tc, tn) query rows
        if ragged:
            xq = _mask_tail(xq, n, n_total, tn)
        if matmul_dtype is not None:
            xq = xq.astype(matmul_dtype)

    # energy_rows += xq @ xk^T : contract the spatial axis directly (no transpose).
    att_ref[0] += lax.dot_general(
        xq, xk,
        dimension_numbers=(((1,), (1,)), ((), ())),
        preferred_element_type=jnp.float32)

    @pl.when(n == pl.num_programs(2) - 1)
    def _():
        energy = att_ref[0]                    # (tc, C) f32
        # softmax(row_max - energy) == exp(row_min - energy) / sum(exp(row_min - energy))
        row_min = jnp.min(energy, axis=-1, keepdims=True)
        e = jnp.exp(row_min - energy)
        att_ref[0] = e / jnp.sum(e, axis=-1, keepdims=True)


# ---------------------------------------------------------------------------
# Pass 2: out_rows = gamma * (attention_rows @ x_tile) + x_rows
# ---------------------------------------------------------------------------
def _apply_attention_kernel(gamma_ref, att_ref, x_ref, o_ref, *, tc, num_ct, matmul_dtype):
    att = att_ref[0]                           # (tc, C) f32 attention rows
    xt = x_ref[0]                              # (C, tn)  value tile
    if num_ct == 1:
        x_res = xt                             # residual rows == value rows
    else:
        row0 = pl.multiple_of(pl.program_id(1) * tc, tc)
        x_res = x_ref[0, pl.ds(row0, tc), :]   # (tc, tn) residual rows, sliced in VMEM

    if matmul_dtype is not None:
        out = jnp.dot(att.astype(matmul_dtype), xt.astype(matmul_dtype),
                      preferred_element_type=jnp.float32)
    else:
        out = jnp.dot(att, xt.astype(jnp.float32),
                      preferred_element_type=jnp.float32)

    gamma = gamma_ref[0]                       # scalar from SMEM
    o_ref[0] = (gamma * out + x_res.astype(jnp.float32)).astype(o_ref.dtype)


# ---------------------------------------------------------------------------
# Wrapper
# ---------------------------------------------------------------------------
def cam_module(x, gamma, *, tn_target=1024, tc_target=256, matmul_dtype=None):
    """x: (B, C, H, W), gamma: (1,) -> gamma * (softmax(rowmax(E)-E) @ x) + x (NCHW)."""
    B, C, H, W = x.shape
    N = H * W
    assert tn_target > 0 and tn_target % 128 == 0
    x_flat = x.reshape(B, C, N)

    # Spatial (lane) tile: full N when it fits (also covers N < 128), otherwise a
    # 128-aligned tile; a ragged tail is masked inside pass 1 (no jnp.pad copy).
    tn = N if N <= tn_target else tn_target
    num_n = pl.cdiv(N, tn)
    ragged = (N % tn) != 0

    # Channel-row tile: caps the attention/accumulator footprint at tc*C.
    tc = _pick_row_tile(C, tc_target)
    num_ct = C // tc

    vmem_limit = 64 * 1024 * 1024  # within physical VMEM on v5e/v6e/v7x

    # ---- Pass 1: attention (B, C, C) f32 ----
    if num_ct == 1:
        p1_in_specs = [pl.BlockSpec((1, C, tn), lambda b, ci, n: (b, 0, n))]
        p1_args = (x_flat,)
    else:
        p1_in_specs = [
            pl.BlockSpec((1, tc, tn), lambda b, ci, n: (b, ci, n)),   # query rows
            pl.BlockSpec((1, C, tn), lambda b, ci, n: (b, 0, n)),     # all key rows
        ]
        p1_args = (x_flat, x_flat)

    energy_kernel = functools.partial(
        _energy_softmax_kernel, n_total=N, tn=tn, ragged=ragged, matmul_dtype=matmul_dtype)

    attention = pl.pallas_call(
        energy_kernel,
        out_shape=jax.ShapeDtypeStruct((B, C, C), jnp.float32),
        grid=(B, num_ct, num_n),
        in_specs=p1_in_specs,
        out_specs=pl.BlockSpec((1, tc, C), lambda b, ci, n: (b, ci, 0)),
        compiler_params=pltpu.CompilerParams(
            dimension_semantics=("parallel", "parallel", "arbitrary"),
            vmem_limit_bytes=vmem_limit),
    )(*p1_args)

    # ---- Pass 2: out = gamma * (attention @ x) + x ----
    apply_kernel = functools.partial(
        _apply_attention_kernel, tc=tc, num_ct=num_ct, matmul_dtype=matmul_dtype)

    out_flat = pl.pallas_call(
        apply_kernel,
        out_shape=jax.ShapeDtypeStruct((B, C, N), x.dtype),
        grid=(B, num_ct, num_n),
        in_specs=[
            pl.BlockSpec(memory_space=pltpu.MemorySpace.SMEM),        # gamma (1,)
            pl.BlockSpec((1, tc, C), lambda b, ci, n: (b, ci, 0)),    # attention rows
            pl.BlockSpec((1, C, tn), lambda b, ci, n: (b, 0, n)),     # value tile
        ],
        out_specs=pl.BlockSpec((1, tc, tn), lambda b, ci, n: (b, ci, n)),
        compiler_params=pltpu.CompilerParams(
            dimension_semantics=("parallel", "parallel", "parallel"),
            vmem_limit_bytes=vmem_limit),
    )(gamma, attention, x_flat)

    return out_flat.reshape(B, C, H, W)


def cam_reference(x, gamma, *, matmul_dtype=None):
    """Pure-JAX mirror of CAM_Module.forward (optionally with bf16 matmul operands)."""
    B, C, H, W = x.shape
    xf = x.reshape(B, C, H * W)
    xq = xf if matmul_dtype is None else xf.astype(matmul_dtype)
    energy = jnp.einsum("bcn,bdn->bcd", xq, xq,
                        preferred_element_type=jnp.float32,
                        precision=lax.Precision.HIGHEST)
    energy_new = jnp.max(energy, axis=-1, keepdims=True) - energy
    attention = jax.nn.softmax(energy_new, axis=-1)
    att = attention if matmul_dtype is None else attention.astype(matmul_dtype)
    xv = xf if matmul_dtype is None else xf.astype(matmul_dtype)
    out = jnp.einsum("bcd,bdn->bcn", att, xv,
                     preferred_element_type=jnp.float32,
                     precision=lax.Precision.HIGHEST)
    return (gamma[0] * out.reshape(B, C, H, W) + x.astype(jnp.float32))


if __name__ == "__main__":
    key = jax.random.PRNGKey(0)
    B, C, H, W = 2, 4, 16, 16
    # Moderate feature-map scale: the softmax logits grow with N = H*W, so this keeps
    # the f32 reference comparison meaningful across backend matmul-precision modes.
    x = 0.2 * jax.random.normal(key, (B, C, H, W), dtype=jnp.float32)

    gamma0 = jnp.zeros((1,), dtype=jnp.float32)      # exactly the module's init
    gamma1 = jnp.array([0.5], dtype=jnp.float32)     # exercises the attention path

    # Default full-f32 path.
    out0 = jax.block_until_ready(cam_module(x, gamma0))
    out1 = jax.block_until_ready(cam_module(x, gamma1))
    assert jnp.allclose(out0, cam_reference(x, gamma0), atol=1e-5, rtol=1e-5), "f32, gamma=0"
    assert jnp.allclose(out1, cam_reference(x, gamma1), atol=5e-3, rtol=5e-3), "f32, gamma=0.5"

    # Ragged spatial tiling (N = 169, tn = 128): exercises the in-kernel tail mask.
    x_rag = 0.2 * jax.random.normal(jax.random.PRNGKey(1), (2, 4, 13, 13), jnp.float32)
    out_rag = jax.block_until_ready(cam_module(x_rag, gamma1, tn_target=128))
    assert jnp.allclose(out_rag, cam_reference(x_rag, gamma1), atol=5e-3, rtol=5e-3), "ragged N"

    # Channel-row tiling (C = 16, tc = 8): exercises the C-tile / residual-slice path.
    x_ct = 0.2 * jax.random.normal(jax.random.PRNGKey(2), (1, 16, 8, 8), jnp.float32)
    out_ct = jax.block_until_ready(cam_module(x_ct, gamma1, tc_target=8))
    assert jnp.allclose(out_ct, cam_reference(x_ct, gamma1), atol=5e-3, rtol=5e-3), "C tiles"

    # bf16 MXU fast path, validated against a bf16-operand-consistent reference.
    out_bf = jax.block_until_ready(cam_module(x, gamma1, matmul_dtype=jnp.bfloat16))
    ref_bf = cam_reference(x, gamma1, matmul_dtype=jnp.bfloat16)
    assert jnp.allclose(out_bf, ref_bf, atol=3e-2, rtol=3e-2), "bf16 matmul path"

    print("KERNEL_OK")
</pallas_src>

<mosaic_0001>
module attributes {stable_mosaic.version = 11 : i64} {
  func.func @_energy_softmax_kernel(%arg0: i32, %arg1: i32, %arg2: i32, %arg3: memref<1x4x256xf32, #tpu.memory_space<vmem>>, %arg4: memref<1x4x4xf32, #tpu.memory_space<vmem>>) attributes {dimension_semantics = [#tpu.dimension_semantics<parallel>, #tpu.dimension_semantics<parallel>, #tpu.dimension_semantics<arbitrary>], iteration_bounds = array<i64: 2, 1, 1>, scalar_prefetch = 0 : i64, scratch_operands = 0 : i64, tpu.core_type = #tpu.core_type<tc>, window_params = [{transform_indices = @transform_0, window_bounds = array<i64: 1, 4, 256>}, {transform_indices = @transform_1, window_bounds = array<i64: 1, 4, 4>}]} {
    %c0_i32 = arith.constant 0 : i32
    %0 = arith.cmpi eq, %arg2, %c0_i32 : i32
    %1 = arith.extui %0 : i1 to i32
    %c0_i32_0 = arith.constant 0 : i32
    %2 = arith.cmpi ne, %1, %c0_i32_0 : i32
    scf.if %2 {
      %cst_11 = arith.constant 0.000000e+00 : f32
      %15 = vector.broadcast %cst_11 : f32 to vector<1x4x4xf32>
      %c0_12 = arith.constant 0 : index
      %c0_13 = arith.constant 0 : index
      %c0_14 = arith.constant 0 : index
      %16 = vector.load %arg4[%c0_12, %c0_13, %c0_14] : memref<1x4x4xf32, #tpu.memory_space<vmem>>, vector<1x4x4xf32>
      tpu.vector_store %arg4[%c0_12, %c0_13, %c0_14], %15 {strides = array<i32>} : memref<1x4x4xf32, #tpu.memory_space<vmem>>, vector<1x4x4xf32>,
    } else {
    }
    %c0 = arith.constant 0 : index
    %c0_1 = arith.constant 0 : index
    %c0_2 = arith.constant 0 : index
    %3 = vector.load %arg3[%c0, %c0_1, %c0_2] : memref<1x4x256xf32, #tpu.memory_space<vmem>>, vector<1x4x256xf32>
    %4 = vector.shape_cast %3 : vector<1x4x256xf32> to vector<4x256xf32>
    %c0_3 = arith.constant 0 : index
    %c0_4 = arith.constant 0 : index
    %c0_5 = arith.constant 0 : index
    %5 = vector.load %arg4[%c0_3, %c0_4, %c0_5] : memref<1x4x4xf32, #tpu.memory_space<vmem>>, vector<1x4x4xf32>
    %6 = vector.shape_cast %5 : vector<1x4x4xf32> to vector<4x4xf32>
    %cst = arith.constant dense<0.000000e+00> : vector<4x4xf32>
    %7 = tpu.matmul %4, %4, %cst {dimension_numbers = #tpu.dot_dimension_numbers<[1], [1], [0], [0], [0, 0, 1, 0], [], []>} : vector<4x256xf32>, vector<4x256xf32>, vector<4x4xf32> -> vector<4x4xf32>
    %8 = arith.addf %6, %7 : vector<4x4xf32>
    %c0_6 = arith.constant 0 : index
    %c0_7 = arith.constant 0 : index
    %c0_8 = arith.constant 0 : index
    %9 = vector.load %arg4[%c0_6, %c0_7, %c0_8] : memref<1x4x4xf32, #tpu.memory_space<vmem>>, vector<1x4x4xf32>
    %10 = vector.shape_cast %9 : vector<1x4x4xf32> to vector<4x4xf32>
    %11 = vector.shape_cast %8 : vector<4x4xf32> to vector<1x4x4xf32>
    tpu.vector_store %arg4[%c0_6, %c0_7, %c0_8], %11 {strides = array<i32>} : memref<1x4x4xf32, #tpu.memory_space<vmem>>, vector<1x4x4xf32>,
    %c0_i32_9 = arith.constant 0 : i32
    %12 = arith.cmpi eq, %arg2, %c0_i32_9 : i32
    %13 = arith.extui %12 : i1 to i32
    %c0_i32_10 = arith.constant 0 : i32
    %14 = arith.cmpi ne, %13, %c0_i32_10 : i32
    scf.if %14 {
      %c0_11 = arith.constant 0 : index
      %c0_12 = arith.constant 0 : index
      %c0_13 = arith.constant 0 : index
      %15 = vector.load %arg4[%c0_11, %c0_12, %c0_13] : memref<1x4x4xf32, #tpu.memory_space<vmem>>, vector<1x4x4xf32>
      %16 = vector.shape_cast %15 : vector<1x4x4xf32> to vector<4x4xf32>
      %cst_14 = arith.constant dense<0x7F800000> : vector<4xf32>
      %17 = vector.multi_reduction <minimumf>, %16, %cst_14 [1] : vector<4x4xf32> to vector<4xf32>
      %18 = vector.shape_cast %17 : vector<4xf32> to vector<4x1xf32>
      %19 = vector.broadcast %18 : vector<4x1xf32> to vector<4x4xf32>
      %20 = arith.subf %19, %16 : vector<4x4xf32>
      %21 = math.exp %20 : vector<4x4xf32>
      %cst_15 = arith.constant dense<0.000000e+00> : vector<4xf32>
      %22 = vector.multi_reduction <add>, %21, %cst_15 [1] : vector<4x4xf32> to vector<4xf32>
      %23 = vector.shape_cast %22 : vector<4xf32> to vector<4x1xf32>
      %24 = vector.broadcast %23 : vector<4x1xf32> to vector<4x4xf32>
      %25 = arith.divf %21, %24 : vector<4x4xf32>
      %c0_16 = arith.constant 0 : index
      %c0_17 = arith.constant 0 : index
      %c0_18 = arith.constant 0 : index
      %26 = vector.load %arg4[%c0_16, %c0_17, %c0_18] : memref<1x4x4xf32, #tpu.memory_space<vmem>>, vector<1x4x4xf32>
      %27 = vector.shape_cast %26 : vector<1x4x4xf32> to vector<4x4xf32>
      %28 = vector.shape_cast %25 : vector<4x4xf32> to vector<1x4x4xf32>
      tpu.vector_store %arg4[%c0_16, %c0_17, %c0_18], %28 {strides = array<i32>} : memref<1x4x4xf32, #tpu.memory_space<vmem>>, vector<1x4x4xf32>,
    } else {
    }
    return
  }
  func.func @transform_0(%arg0: i32, %arg1: i32, %arg2: i32) -> (i32, i32, i32) {
    %c0_i32 = arith.constant 0 : i32
    %c0_i32_0 = arith.constant 0 : i32
    return %arg0, %c0_i32, %arg2 : i32, i32, i32
  }
  func.func @transform_1(%arg0: i32, %arg1: i32, %arg2: i32) -> (i32, i32, i32) {
    %c0_i32 = arith.constant 0 : i32
    %c0_i32_0 = arith.constant 0 : i32
    return %arg0, %arg1, %c0_i32 : i32, i32, i32
  }
}

</mosaic_0001>

<bundles_post_ra>
// kernel: tpu_custom_call.1
= control target key start
LH: loop header
LB: loop body
LE: loop exit
PB: predicated region body
PF: predicated region fallthrough
CT: control target
= control target key end

     0   :  { %6 = vsyncpa [#allocation3], 0  ;;  %s713_s0 = inlined_call_operand.hbm [shape: f32[2,4,256], index: 0, kind: input, shape index: {}]   ;;  %s714_s1 = inlined_call_operand.hbm [shape: f32[2,4,4], index: 1, kind: output, shape index: {}]  }
   0x1   :  { %8 = vsyncpa [#allocation3 + $0x1], 0 }
   0x2   :  { %9 = vsyncpa [#allocation4], 0 }
   0x3   :  { %11 = vsyncpa [#allocation4 + $0x1], 0  ;;  %s565_s6 = smov 0   ;;  %s567_s7 = smov 0  }
   0x4   :  { %s569_s8 = smov 0   ;;  %s571_s9 = smov 0  }
   0x5   :  { %s573_s10 = smov 0   ;;  %s575_s11 = smov 0  }
   0x6 LB: > { %s359_s12 = sadd.s32 4294967295, %s550_s11   ;;  %s360_s13 = sadd.s32 4294967294, %s550_s11   ;;  %s550_s11 = sphi %s575_s11, %s17_s11   ;;  %s546_s10 = sphi %s573_s10, %s726_s10   ;;  %s542_s9 = sphi %s571_s9, %s725_s9   ;;  %s538_s8 = sphi %s569_s8, %s724_s8   ;;  %s534_s7 = sphi %s567_s7, %s723_s7   ;;  %s530_s6 = sphi %s565_s6, %s722_s6  }
   0x7   : > { %s36_s14 = sadd.s32 1, %s546_s10  ;;  %s45_s15 = sadd.s32 1, %s538_s8 }
   0x8   : > { %p38_p0 = scmp.ge.s32.totalorder %s36_s14, 2  ;;  %p52_p1 = scmp.ne.s32.totalorder %s538_s8, %s534_s7 }
   0x9   : > { %p53_p2 = scmp.eq.s32.totalorder %s550_s11, 0  ;;  %p58_p3 = scmp.ne.s32.totalorder %s534_s7, %s530_s6 }
   0xa   : > { %s728_s14 = smov (%p38_p0, %s36_s14), 0  ;;  %p59_p5 = scmp.eq.s32.totalorder %s359_s12, 0 }
   0xb   : > { %p606_p4 = por %p53_p2, %p52_p1  ;;  %s40_s17 = ssub.s32 %s546_s10, %s728_s14 }
   0xc   : > { %p84_p6 = scmp.eq.s32.totalorder %s359_s12, 1  ;;  %p43_p7 = scmp.eq.s32.totalorder %s40_s17, 0 }
   0xd   : > { %p612_p8 = por %p59_p5, %p58_p3  ;;  %p90_p10 = scmp.eq.s32.totalorder %s360_s13, 1 }
   0xe   : > { %p616_p9 = por %p84_p6, %p52_p1  ;;  %p386_p13 = scmp.lt.s32.totalorder %s550_s11, 2 }
   0xf   : > { %s621_s20 = scalar_select %p43_p7, %s538_s8, %s45_s15  }
  0x10   : > { %p623_p11 = por %p90_p10, %p58_p3  ;;  %s110_s22 = sand.u32 1, %s538_s8  }
  0x11   : > { %s363_s23 = sshll.u32 %s110_s22, 3  ;;  %s373_s24 = sshll.u32 %s546_s10, 7 }
  0x12   : > { %s718_s21 = scalar_select %p623_p11, 1, 0 }
  0x13   : > { %s122_s27 = scalar_lea.hbm %s713_s0, %s373_s24  ;;  %s114_s28 = scalar_lea.vmem [#allocation2], %s363_s23 }
  0x14   : > { %s124_s29 = sshll.u32 %s114_s28, 4  ;;  %p636_p0 = pnand %p386_p13, %p606_p4  ;;  %s125_s29 = int_to_ptr.vmem [resolvable:$true] %s124_s29 }
  0x15   : > { %p366_p1 = scmp.ge.s32.totalorder %s550_s11, 1  ;;  %p129_p2 = scmp.lt.s32.totalorder %s550_s11, 3 }
  0x16   : > { %s111_s2 = scalar_lea.sflag [#allocation3], %s110_s22  ;;  %p444_p3 = pneg %p636_p0 }
  0x17   : > { %s455_s3 = scalar_lea.vmem %s125_s29, 128  ;;  %s552_s4 = smov [#allocation2]  }
  0x18   : > { %p456_p5 = scmp.ne.s32.totalorder %s125_s29, %s455_s3  ;;  %s460_s5 = sshll.u32 %s552_s4, 4  ;;  %s461_s5 = int_to_ptr.vmem [resolvable:$false] %s460_s5 }
  0x19   : > { %s462_s12 = scalar_lea.vmem %s461_s5, 256  ;;  %p463_p10 = scmp.lt.s32.totalorder %s125_s29, %s461_s5 }
  0x1a   : > { %p458_p6 = pnand %p456_p5, %p444_p3  ;;  %p464_p12 = scmp.lt.s32.totalorder %s462_s12, %s455_s3 }
  0x1c   : > { %p459_p7 = pneg %p458_p6  ;;  %p465_p4 = por %p464_p12, %p463_p10 }
  0x1e   : > { %p466_p13 = pnand %p465_p4, %p459_p7 }
  0x20   : > { %469 = shalt.err (!%p466_p13)
}
  0x21   : > { %381 = dma.hbm_to_vmem [thread:$0]  (!%p636_p0), %s122_s27, 128, %s125_s29, %s111_s2  }
  0x22   : > { %p130_p11 = pnand %p366_p1, %p129_p2 }
  0x23   : > { %s651_s13 = sand.u32 (!%p130_p11), 1, %s534_s7  }
  0x24   : > { %133 = sbr.rel (%p130_p11) target bundleno = 577 (0x241), region = 24  ;;  %s367_s15 = sshll.u32 (!%p130_p11), %s651_s13, 3 }
  0x25   : > { %s136_s16 = scalar_lea.sflag (!%p130_p11), [#allocation3], %s651_s13  ;;  %s139_s17 = scalar_lea.vmem (!%p130_p11), [#allocation2], %s367_s15 }
  0x29   : > { %521 = dma.done.wait (%p612_p8), %s136_s16, 128  }
  0x2a   : > { %523 = vsyncadd (%p612_p8), %s136_s16, 4294967168  ;;  %s368_s22 = sshll.u32 %s651_s13, 2  ;;  %vm163_vm0 = vcmask 27648   ;;  %v553_v0 = vmov 0.0   ;;  %v165_v1 = vld [vmem:[%s139_s17] sm:$0xff]  ;;  %s370_s18 = sshll.u32 %s542_s9, 6 }
  0x2b   : > { %s660_s23 = scalar_lea.vmem [#allocation5], %s368_s22  ;;  %v168_v2 = vcombine.high %v165_v1, %v165_v1  ;;  %s272_s27 = scalar_lea.hbm %s714_s1, %s370_s18 }
  0x2c   : > { %164 = vst.msk [vmem:[%s660_s23] sm:$0xf] %vm163_vm0, %v553_v0  ;;  %s274_s24 = sshll.u32 %s660_s23, 4  ;;  %s260_s28 = scalar_lea.sflag [#allocation4], %s651_s13  ;;  %s275_s24 = int_to_ptr.vmem [resolvable:$true] %s274_s24 }
  0x2d   : > { %200 = vmatprep.subr.mxu0 %v168_v2  ;;  %234 = vmatprep.mubr.f32.mxu0 %v168_v2  ;;  %s470_s29 = scalar_lea.vmem %s275_s24, 64  ;;  %s554_s30 = smov [#allocation5]  }
  0x2e   : > { %201 = vmatpush1.xpose.msra.mxu0 %v165_v1  ;;  %p471_p8 = scmp.ne.s32.totalorder %s275_s24, %s470_s29  ;;  %s474_s2 = sshll.u32 %s554_s30, 4  ;;  %s475_s2 = int_to_ptr.vmem [resolvable:$false] %s474_s2 }
  0x2f   : > { %s476_s9 = scalar_lea.vmem %s475_s2, 128  ;;  %p477_p0 = scmp.lt.s32.totalorder %s275_s24, %s475_s2 }
  0x30   : > { %p472_p11 = pnand %p471_p8, %p616_p9  ;;  %p478_p1 = scmp.lt.s32.totalorder %s476_s9, %s470_s29 }
  0x31   : > { %235 = vmatmul.mubr.f32.vlgmr.msra.gmra.mxu0 %v165_v1 }
  0x32   : > { %p473_p12 = pneg %p472_p11  ;;  %p479_p2 = por %p478_p1, %p477_p0 }
  0x33   : > { %v166_v3 = vld [vmem:[%s660_s23] sm:$0xf] }
  0x34   : > { %p480_p3 = pnand %p479_p2, %p473_p12 }
  0xf1   : > { %v236_v4 = vpop.f32.mrf.mxu0 }
  0xf2   : > { %v240_v5 = vadd.f32 %v236_v4, %v166_v3 }
  0xf3   : > { %v238_v6 = vpop.f32.mrf.mxu0 }
  0xf4   : > { %242 = vst.msk [vmem:[%s660_s23] sm:$0xf] %vm163_vm0, %v240_v5 }
  0xfb   : > { %v246_v7 = vld [vmem:[%s660_s23] sm:$0xf] }
  0xfc   : > { %v247_v8 = vsel %vm163_vm0, %v246_v7, inf }
  0xfd   : > { %248 = vmin.xlane.f32.xlu0 %v247_v8 }
 0x186   : > { %v249_v9 = vpop.xlane.xlu0 %248 }
 0x187   : > { %v250_v10 = vsub.f32 %v249_v9, %v246_v7 }
 0x189   : > { %v251_v11 = vmul.f32 1.442695, %v250_v10 }
 0x18b   : > { %438 = vpow2.f32 %v251_v11 }
 0x198   : > { %v439_v12 = vpop.eup %438 }
 0x199   : > { %v253_v13 = vsel %vm163_vm0, %v439_v12, 0.0 }
 0x19a   : > { %254 = vadd.xlane.f32.xlu0 %v253_v13 }
 0x223   : > { %v255_v14 = vpop.xlane.xlu0 %254 }
 0x224   : > { %440 = vrcp.f32 %v255_v14 }
 0x231   : > { %v441_v15 = vpop.eup %440 }
 0x232   : > { %v257_v16 = vmul.f32 %v441_v15, %v439_v12 }
 0x234   : > { %258 = vst.msk [vmem:[%s660_s23] sm:$0xf] %vm163_vm0, %v257_v16 }
 0x235   : > { %483 = shalt.err (!%p480_p3)
}
 0x236   : > { %s484_s3 = scalar_lea.hbm %s272_s27, 64  ;;  %s488_s12 = scalar_lea.hbm %s714_s1, 128 }
 0x237   : > { %p485_p5 = scmp.ne.s32.totalorder %s272_s27, %s484_s3  ;;  %p489_p10 = scmp.lt.s32.totalorder %s272_s27, %s714_s1 }
 0x238   : > { %p490_p4 = scmp.lt.s32.totalorder %s488_s12, %s484_s3 }
 0x239   : > { %p486_p6 = pnand %p485_p5, %p616_p9 }
 0x23a   : > { %p491_p13 = por %p490_p4, %p489_p10 }
 0x23b   : > { %p487_p7 = pneg %p486_p6 }
 0x23d   : > { %p492_p8 = pnand %p491_p13, %p487_p7 }
 0x23f   : > { %495 = shalt.err (!%p492_p8)
}
 0x240   : > { %376 = dma.vmem_to_hbm [thread:$0]  (%p616_p9), %s275_s24, 64, %s272_s27, %s260_s28  }
 0x241 PF: > { %s286_s16 = sand.u32 1, %s530_s6   ;;  %p720_p11 = scmp.ne.s32.totalorder %s718_s21, 0 }
 0x242   : > { %p721_p12 = scmp.ge.s32.totalorder %s550_s11, 2  ;;  %s287_s17 = scalar_lea.sflag [#allocation4], %s286_s16 }
 0x244   : > { %p383_p0 = pnand %p721_p12, %p720_p11 }
 0x246   : > { %p384_p1 = pneg %p383_p0 }
 0x248   : > { %525 = dma.done.wait (%p384_p1), %s287_s17, 64  }
 0x249   : > { %527 = vsyncadd (%p384_p1), %s287_s17, 4294967232  ;;  %s17_s11 = sadd.s32 1, %s550_s11   ;;  %s722_s6 = smov %s534_s7 }
 0x24a   : > { %p14_p2 = scmp.ge.s32.totalorder %s17_s11, 4   ;;  %s723_s7 = smov %s538_s8 }
 0x24b   : > { %s724_s8 = smov %s621_s20  ;;  %s725_s9 = smov %s546_s10 }
 0x24c   : > { %s726_s10 = smov %s728_s14  ;;  %16 = sbr.rel (!%p14_p2) target bundleno = 6 (0x6), region = 77 }
 0x251   :  { %292 = vsyncpa [#allocation3], 1 }
 0x252   :  { %294 = vsyncpa [#allocation3 + $0x1], 1 }
 0x253   :  { %295 = vsyncpa [#allocation4], 1 }
 0x254   :  { %297 = vsyncpa [#allocation4 + $0x1], 1 }

</bundles_post_ra>
